<compile_context>
chip_gen: v5e
topology: v5e:2x2
jax: 0.10.0
libtpu: 0.0.40
codegen_flags: <defaults>
</compile_context>

<pallas_src>
import functools

import jax
import jax.numpy as jnp
from jax.experimental import pallas as pl
from jax.experimental.pallas import tpu as pltpu


# ---------------------------------------------------------------------------
# Fused kernel: depthwise conv (+folded BN scale) + shift + ReLU + SE + pointwise
# ---------------------------------------------------------------------------

def dsc_fused_kernel(x_ref, coord_ref, dww_ref, bnb_ref,
                     w1_ref, b1_ref, w2_ref, b2_ref,
                     pw_ref, pwb_ref, o_ref, *, KH, KW, dil, H, W):
    # x_ref    : (1, Cin, H*W)   NCHW input, spatial flattened onto lanes
    # coord_ref: (2, H*W) int32  row 0 = y coord, row 1 = x coord of each pixel
    # dww_ref  : (Cin, KH*KW)    depthwise weights with BN scale pre-folded
    # bnb_ref  : (Cin, 1)        folded BatchNorm shift (eval mode)
    # w1/b1    : (Cin, Cr),(1,Cr)   SE fc1 ; w2/b2 : (Cin, Cr),(Cin,1)  SE fc2
    # pw_ref   : (Cout, Cin)     1x1 pointwise weight (PyTorch layout)
    # pwb_ref  : (Cout, 1)       pointwise bias column
    # o_ref    : (1, Cout, H*W)  lane-dense, NCHW-ordered output
    Cin = dww_ref.shape[0]
    Cout = pw_ref.shape[0]
    HW = H * W

    x = x_ref[0]                       # (Cin, HW)  channels on sublanes
    wt = dww_ref[...]                  # (Cin, KH*KW)
    yy = coord_ref[0:1, :]             # (1, HW)
    xx = coord_ref[1:2, :]             # (1, HW)

    ph = dil * (KH - 1) // 2           # PyTorch "same" padding (odd kernels)
    pw_pad = dil * (KW - 1) // 2

    # ---- depthwise conv: roll-based taps, edge-masked (zero padding) --------
    acc = jnp.zeros((Cin, HW), jnp.float32)
    for i in range(KH):                # static taps -> static roll shift / mask
        for j in range(KW):
            oy = i * dil - ph
            ox = j * dil - pw_pad
            s = oy * W + ox            # source offset in flat spatial index
            shifted = x if s == 0 else pltpu.roll(x, shift=(-s) % HW, axis=1)
            cond = None
            if oy != 0:                # mask rows where y+oy falls off the image
                cond = (yy >= -oy) & (yy <= (H - 1) - oy)
            if ox != 0:                # mask cols where x+ox falls off the image
                cx = (xx >= -ox) & (xx <= (W - 1) - ox)
                cond = cx if cond is None else (cond & cx)
            tap = shifted if cond is None else jnp.where(cond, shifted, 0.0)
            acc = acc + tap * wt[:, i * KW + j:i * KW + j + 1]   # (Cin,1) bcast

    # ---- BatchNorm shift (scale already folded into weights) + ReLU ---------
    y = jnp.maximum(acc + bnb_ref[...], 0.0)                    # (Cin, HW)

    # ---- SqueezeExcitation: avgpool -> fc1 -> ReLU -> fc2 -> sigmoid --------
    s_pool = jnp.sum(y, axis=1, keepdims=True) * (1.0 / HW)     # (Cin, 1)
    h = jnp.maximum(
        jnp.sum(w1_ref[...] * s_pool, axis=0, keepdims=True) + b1_ref[...],
        0.0)                                                    # (1, Cr)
    g = jax.nn.sigmoid(
        jnp.sum(w2_ref[...] * h, axis=1, keepdims=True) + b2_ref[...])  # (Cin,1)

    z = y * g                                                   # SE-scaled activations

    # ---- 1x1 pointwise conv + bias ------------------------------------------
    pw = pw_ref[...]                                            # (Cout, Cin)
    if Cin >= 64 and Cout >= 64:
        # Production channel counts: MXU matmul with bf16 operands, f32 accum.
        out = jnp.dot(pw.astype(jnp.bfloat16), z.astype(jnp.bfloat16),
                      preferred_element_type=jnp.float32)
    else:
        # Toy channel counts: VPU broadcast-MACs (K=4 would waste the MXU).
        out = jnp.zeros((Cout, HW), jnp.float32)
        for c in range(Cin):
            out = out + pw[:, c:c + 1] * z[c:c + 1, :]
    out = out + pwb_ref[...]                                    # (Cout, HW)
    o_ref[...] = out.reshape(1, Cout, HW)


# ---------------------------------------------------------------------------
# Param prep: PyTorch-layout params -> kernel layouts (BN scale folded here)
# ---------------------------------------------------------------------------

def prepare_kernel_params(p):
    cin, _, kh, kw = p["dw_w"].shape
    cout = p["pw_w"].shape[0]
    cr = p["se_w1"].shape[0]
    scale = p["bn_gamma"] * jax.lax.rsqrt(p["bn_var"] + p["bn_eps"])
    shift = p["bn_beta"] - p["bn_mean"] * scale
    return dict(
        dw=(p["dw_w"].reshape(cin, kh * kw) * scale[:, None]).astype(jnp.float32),
        bn_shift=shift.reshape(cin, 1).astype(jnp.float32),
        se_w1=p["se_w1"].T.astype(jnp.float32),                 # (Cin, Cr)
        se_b1=p["se_b1"].reshape(1, cr).astype(jnp.float32),
        se_w2=p["se_w2"].astype(jnp.float32),                   # (Cin, Cr)
        se_b2=p["se_b2"].reshape(cin, 1).astype(jnp.float32),
        pw_w=p["pw_w"].astype(jnp.float32),                     # (Cout, Cin)
        pw_b=p["pw_b"].reshape(cout, 1).astype(jnp.float32),
    )


# ---------------------------------------------------------------------------
# Wrapper
# ---------------------------------------------------------------------------

def dsc_forward(x_nchw, p, *, dilation=1):
    """DepthwiseSeparableConv forward: (N, Cin, H, W) -> (N, Cout, H, W)."""
    N, Cin, H, W = x_nchw.shape
    _, _, KH, KW = p["dw_w"].shape
    Cout = p["pw_w"].shape[0]
    Cr = p["se_w1"].shape[0]
    HW = H * W

    kp = prepare_kernel_params(p)                       # tiny, one-time fold
    x_flat = x_nchw.reshape(N, Cin, HW).astype(jnp.float32)   # free reshape (NCHW kept)

    # Flat-pixel (y, x) coordinates used for in-kernel halo masking.
    pos = jnp.arange(HW, dtype=jnp.int32)
    coords = jnp.stack([pos // W, pos % W], axis=0)     # (2, HW) int32

    out_flat = pl.pallas_call(
        functools.partial(dsc_fused_kernel, KH=KH, KW=KW, dil=dilation, H=H, W=W),
        out_shape=jax.ShapeDtypeStruct((N, Cout, HW), jnp.float32),
        grid=(N,),
        in_specs=[
            pl.BlockSpec((1, Cin, HW), lambda b: (b, 0, 0)),
            pl.BlockSpec((2, HW), lambda b: (0, 0)),
            pl.BlockSpec((Cin, KH * KW), lambda b: (0, 0)),
            pl.BlockSpec((Cin, 1), lambda b: (0, 0)),
            pl.BlockSpec((Cin, Cr), lambda b: (0, 0)),
            pl.BlockSpec((1, Cr), lambda b: (0, 0)),
            pl.BlockSpec((Cin, Cr), lambda b: (0, 0)),
            pl.BlockSpec((Cin, 1), lambda b: (0, 0)),
            pl.BlockSpec((Cout, Cin), lambda b: (0, 0)),
            pl.BlockSpec((Cout, 1), lambda b: (0, 0)),
        ],
        out_specs=pl.BlockSpec((1, Cout, HW), lambda b: (b, 0, 0)),
        compiler_params=pltpu.CompilerParams(
            dimension_semantics=("parallel",),          # batch axis -> both v7x TCs
            vmem_limit_bytes=32 * 1024 * 1024,          # size from block footprint at prod shapes
        ),
    )(x_flat, coords, kp["dw"], kp["bn_shift"],
      kp["se_w1"], kp["se_b1"], kp["se_w2"], kp["se_b2"],
      kp["pw_w"], kp["pw_b"])

    return out_flat.reshape(N, Cout, H, W)              # free reshape, already NCHW


# ---------------------------------------------------------------------------
# Pure-JAX reference (mirrors the PyTorch module op-for-op) for correctness
# ---------------------------------------------------------------------------

def dsc_reference(x_nchw, p, *, dilation=1):
    x = x_nchw.astype(jnp.float32)
    N, Cin, H, W = x.shape
    _, _, KH, KW = p["dw_w"].shape
    Cout = p["pw_w"].shape[0]
    ph = dilation * (KH - 1) // 2
    pwd = dilation * (KW - 1) // 2
    xp = jnp.pad(x, ((0, 0), (0, 0), (ph, ph), (pwd, pwd)))
    acc = jnp.zeros((N, Cin, H, W), jnp.float32)
    for i in range(KH):
        for j in range(KW):
            acc = acc + xp[:, :, i * dilation:i * dilation + H,
                           j * dilation:j * dilation + W] \
                        * p["dw_w"][:, 0, i, j].reshape(1, Cin, 1, 1)
    scale = p["bn_gamma"] * jax.lax.rsqrt(p["bn_var"] + p["bn_eps"])
    shift = p["bn_beta"] - p["bn_mean"] * scale
    y = jnp.maximum(acc * scale.reshape(1, Cin, 1, 1)
                    + shift.reshape(1, Cin, 1, 1), 0.0)
    s = jnp.mean(y, axis=(2, 3))                                     # (N, Cin)
    h = jnp.maximum(s @ p["se_w1"].T + p["se_b1"], 0.0)              # (N, Cr)
    g = jax.nn.sigmoid(h @ p["se_w2"].T + p["se_b2"])                # (N, Cin)
    z = y * g[:, :, None, None]
    out = jnp.einsum("oc,nchw->nohw", p["pw_w"], z) \
        + p["pw_b"].reshape(1, Cout, 1, 1)
    return out


# ---------------------------------------------------------------------------
# Deterministic synthetic parameters (PyTorch layouts, BN in eval mode)
# ---------------------------------------------------------------------------

def dsc_params(key, cin, cout, kh=3, kw=3, se_ratio=2, eps=1e-5):
    ks = jax.random.split(key, 11)
    cr = cin // se_ratio
    if cr == 0:                 # mirrors: if out_channels // reduction == 0 -> reduction=1
        cr = cin
    return dict(
        dw_w=0.1 * jax.random.normal(ks[4], (cin, 1, kh, kw), jnp.float32),
        bn_gamma=1.0 + 0.1 * jax.random.normal(ks[0], (cin,), jnp.float32),
        bn_beta=0.1 * jax.random.normal(ks[1], (cin,), jnp.float32),
        bn_mean=0.1 * jax.random.normal(ks[2], (cin,), jnp.float32),
        bn_var=1.0 + 0.1 * jnp.abs(jax.random.normal(ks[3], (cin,), jnp.float32)),
        bn_eps=jnp.float32(eps),
        se_w1=0.1 * jax.random.normal(ks[5], (cr, cin), jnp.float32),   # fc1: Conv2d(Cin,Cr,1)
        se_b1=0.1 * jax.random.normal(ks[6], (cr,), jnp.float32),
        se_w2=0.1 * jax.random.normal(ks[7], (cin, cr), jnp.float32),   # fc2: Conv2d(Cr,Cin,1)
        se_b2=0.1 * jax.random.normal(ks[8], (cin,), jnp.float32),
        pw_w=0.1 * jax.random.normal(ks[9], (cout, cin), jnp.float32),  # Conv2d(Cin,Cout,1)
        pw_b=0.1 * jax.random.normal(ks[10], (cout,), jnp.float32),
    )


# ---------------------------------------------------------------------------

if __name__ == "__main__":
    key = jax.random.PRNGKey(0)
    kx, kp = jax.random.split(key)

    N, Cin, H, W = 2, 4, 16, 16
    Cout = 8

    x = jax.random.normal(kx, (N, Cin, H, W), jnp.float32)   # NCHW like PyTorch
    params = dsc_params(kp, Cin, Cout)

    out = jax.block_until_ready(jax.jit(dsc_forward)(x, params))
    assert out.shape == (N, Cout, H, W)
    assert bool(jnp.all(jnp.isfinite(out)))

    ref = jax.block_until_ready(jax.jit(dsc_reference)(x, params))
    max_err = float(jnp.max(jnp.abs(out - ref)))
    assert max_err < 1e-3, f"max abs err {max_err}"

    print("KERNEL_OK")
</pallas_src>

<mosaic_0001>
module attributes {stable_mosaic.version = 11 : i64} {
  func.func @dsc_fused_kernel(%arg0: i32, %arg1: memref<1x4x256xf32, #tpu.memory_space<vmem>>, %arg2: memref<2x256xi32, #tpu.memory_space<vmem>>, %arg3: memref<4x9xf32, #tpu.memory_space<vmem>>, %arg4: memref<4x1xf32, #tpu.memory_space<vmem>>, %arg5: memref<4x2xf32, #tpu.memory_space<vmem>>, %arg6: memref<1x2xf32, #tpu.memory_space<vmem>>, %arg7: memref<4x2xf32, #tpu.memory_space<vmem>>, %arg8: memref<4x1xf32, #tpu.memory_space<vmem>>, %arg9: memref<8x4xf32, #tpu.memory_space<vmem>>, %arg10: memref<8x1xf32, #tpu.memory_space<vmem>>, %arg11: memref<1x8x256xf32, #tpu.memory_space<vmem>>) attributes {dimension_semantics = [#tpu.dimension_semantics<parallel>], iteration_bounds = array<i64: 2>, scalar_prefetch = 0 : i64, scratch_operands = 0 : i64, tpu.core_type = #tpu.core_type<tc>, window_params = [{transform_indices = @transform_0, window_bounds = array<i64: 1, 4, 256>}, {pipeline_mode = #tpu.pipeline_mode<synchronous>, transform_indices = @transform_1, window_bounds = array<i64: 2, 256>}, {pipeline_mode = #tpu.pipeline_mode<synchronous>, transform_indices = @transform_2, window_bounds = array<i64: 4, 9>}, {pipeline_mode = #tpu.pipeline_mode<synchronous>, transform_indices = @transform_3, window_bounds = array<i64: 4, 1>}, {pipeline_mode = #tpu.pipeline_mode<synchronous>, transform_indices = @transform_4, window_bounds = array<i64: 4, 2>}, {pipeline_mode = #tpu.pipeline_mode<synchronous>, transform_indices = @transform_5, window_bounds = array<i64: 1, 2>}, {pipeline_mode = #tpu.pipeline_mode<synchronous>, transform_indices = @transform_6, window_bounds = array<i64: 4, 2>}, {pipeline_mode = #tpu.pipeline_mode<synchronous>, transform_indices = @transform_7, window_bounds = array<i64: 4, 1>}, {pipeline_mode = #tpu.pipeline_mode<synchronous>, transform_indices = @transform_8, window_bounds = array<i64: 8, 4>}, {pipeline_mode = #tpu.pipeline_mode<synchronous>, transform_indices = @transform_9, window_bounds = array<i64: 8, 1>}, {transform_indices = @transform_10, window_bounds = array<i64: 1, 8, 256>}]} {
    %c0 = arith.constant 0 : index
    %c0_0 = arith.constant 0 : index
    %c0_1 = arith.constant 0 : index
    %0 = vector.load %arg1[%c0, %c0_0, %c0_1] : memref<1x4x256xf32, #tpu.memory_space<vmem>>, vector<1x4x256xf32>
    %1 = vector.shape_cast %0 : vector<1x4x256xf32> to vector<4x256xf32>
    %c0_2 = arith.constant 0 : index
    %c0_3 = arith.constant 0 : index
    %2 = vector.load %arg3[%c0_2, %c0_3] : memref<4x9xf32, #tpu.memory_space<vmem>>, vector<4x9xf32>
    %c0_4 = arith.constant 0 : index
    %c0_5 = arith.constant 0 : index
    %3 = vector.load %arg2[%c0_4, %c0_5] : memref<2x256xi32, #tpu.memory_space<vmem>>, vector<1x256xi32>
    %c1 = arith.constant 1 : index
    %c0_6 = arith.constant 0 : index
    %4 = vector.load %arg2[%c1, %c0_6] : memref<2x256xi32, #tpu.memory_space<vmem>>, vector<1x256xi32>
    %cst = arith.constant 0.000000e+00 : f32
    %5 = vector.broadcast %cst : f32 to vector<4x256xf32>
    %c17_i32 = arith.constant 17 : i32
    %6 = tpu.dynamic_rotate %1 by %c17_i32 dim 1 : vector<4x256xf32>, i32 -> vector<4x256xf32>
    %c1_i32 = arith.constant 1 : i32
    %7 = vector.broadcast %c1_i32 : i32 to vector<1x256xi32>
    %8 = arith.cmpi sge, %3, %7 : vector<1x256xi32>
    %c16_i32 = arith.constant 16 : i32
    %9 = vector.broadcast %c16_i32 : i32 to vector<1x256xi32>
    %10 = arith.cmpi sle, %3, %9 : vector<1x256xi32>
    %11 = arith.andi %8, %10 : vector<1x256xi1>
    %c1_i32_7 = arith.constant 1 : i32
    %12 = vector.broadcast %c1_i32_7 : i32 to vector<1x256xi32>
    %13 = arith.cmpi sge, %4, %12 : vector<1x256xi32>
    %c16_i32_8 = arith.constant 16 : i32
    %14 = vector.broadcast %c16_i32_8 : i32 to vector<1x256xi32>
    %15 = arith.cmpi sle, %4, %14 : vector<1x256xi32>
    %16 = arith.andi %13, %15 : vector<1x256xi1>
    %17 = arith.andi %11, %16 : vector<1x256xi1>
    %cst_9 = arith.constant 0.000000e+00 : f32
    %18 = vector.shape_cast %17 : vector<1x256xi1> to vector<1x256xi1>
    %19 = vector.broadcast %18 : vector<1x256xi1> to vector<4x256xi1>
    %20 = vector.broadcast %cst_9 : f32 to vector<4x256xf32>
    %21 = arith.select %19, %6, %20 : vector<4x256xi1>, vector<4x256xf32>
    %22 = vector.extract_strided_slice %2 {offsets = [0, 0], sizes = [4, 1], strides = [1, 1]} : vector<4x9xf32> to vector<4x1xf32>
    %23 = vector.broadcast %22 : vector<4x1xf32> to vector<4x256xf32>
    %24 = arith.mulf %21, %23 : vector<4x256xf32>
    %25 = arith.addf %5, %24 : vector<4x256xf32>
    %c16_i32_10 = arith.constant 16 : i32
    %26 = tpu.dynamic_rotate %1 by %c16_i32_10 dim 1 : vector<4x256xf32>, i32 -> vector<4x256xf32>
    %c1_i32_11 = arith.constant 1 : i32
    %27 = vector.broadcast %c1_i32_11 : i32 to vector<1x256xi32>
    %28 = arith.cmpi sge, %3, %27 : vector<1x256xi32>
    %c16_i32_12 = arith.constant 16 : i32
    %29 = vector.broadcast %c16_i32_12 : i32 to vector<1x256xi32>
    %30 = arith.cmpi sle, %3, %29 : vector<1x256xi32>
    %31 = arith.andi %28, %30 : vector<1x256xi1>
    %cst_13 = arith.constant 0.000000e+00 : f32
    %32 = vector.shape_cast %31 : vector<1x256xi1> to vector<1x256xi1>
    %33 = vector.broadcast %32 : vector<1x256xi1> to vector<4x256xi1>
    %34 = vector.broadcast %cst_13 : f32 to vector<4x256xf32>
    %35 = arith.select %33, %26, %34 : vector<4x256xi1>, vector<4x256xf32>
    %36 = vector.extract_strided_slice %2 {offsets = [0, 1], sizes = [4, 1], strides = [1, 1]} : vector<4x9xf32> to vector<4x1xf32>
    %37 = vector.broadcast %36 : vector<4x1xf32> to vector<4x256xf32>
    %38 = arith.mulf %35, %37 : vector<4x256xf32>
    %39 = arith.addf %25, %38 : vector<4x256xf32>
    %c15_i32 = arith.constant 15 : i32
    %40 = tpu.dynamic_rotate %1 by %c15_i32 dim 1 : vector<4x256xf32>, i32 -> vector<4x256xf32>
    %c1_i32_14 = arith.constant 1 : i32
    %41 = vector.broadcast %c1_i32_14 : i32 to vector<1x256xi32>
    %42 = arith.cmpi sge, %3, %41 : vector<1x256xi32>
    %c16_i32_15 = arith.constant 16 : i32
    %43 = vector.broadcast %c16_i32_15 : i32 to vector<1x256xi32>
    %44 = arith.cmpi sle, %3, %43 : vector<1x256xi32>
    %45 = arith.andi %42, %44 : vector<1x256xi1>
    %c-1_i32 = arith.constant -1 : i32
    %46 = vector.broadcast %c-1_i32 : i32 to vector<1x256xi32>
    %47 = arith.cmpi sge, %4, %46 : vector<1x256xi32>
    %c14_i32 = arith.constant 14 : i32
    %48 = vector.broadcast %c14_i32 : i32 to vector<1x256xi32>
    %49 = arith.cmpi sle, %4, %48 : vector<1x256xi32>
    %50 = arith.andi %47, %49 : vector<1x256xi1>
    %51 = arith.andi %45, %50 : vector<1x256xi1>
    %cst_16 = arith.constant 0.000000e+00 : f32
    %52 = vector.shape_cast %51 : vector<1x256xi1> to vector<1x256xi1>
    %53 = vector.broadcast %52 : vector<1x256xi1> to vector<4x256xi1>
    %54 = vector.broadcast %cst_16 : f32 to vector<4x256xf32>
    %55 = arith.select %53, %40, %54 : vector<4x256xi1>, vector<4x256xf32>
    %56 = vector.extract_strided_slice %2 {offsets = [0, 2], sizes = [4, 1], strides = [1, 1]} : vector<4x9xf32> to vector<4x1xf32>
    %57 = vector.broadcast %56 : vector<4x1xf32> to vector<4x256xf32>
    %58 = arith.mulf %55, %57 : vector<4x256xf32>
    %59 = arith.addf %39, %58 : vector<4x256xf32>
    %c1_i32_17 = arith.constant 1 : i32
    %60 = tpu.dynamic_rotate %1 by %c1_i32_17 dim 1 : vector<4x256xf32>, i32 -> vector<4x256xf32>
    %c1_i32_18 = arith.constant 1 : i32
    %61 = vector.broadcast %c1_i32_18 : i32 to vector<1x256xi32>
    %62 = arith.cmpi sge, %4, %61 : vector<1x256xi32>
    %c16_i32_19 = arith.constant 16 : i32
    %63 = vector.broadcast %c16_i32_19 : i32 to vector<1x256xi32>
    %64 = arith.cmpi sle, %4, %63 : vector<1x256xi32>
    %65 = arith.andi %62, %64 : vector<1x256xi1>
    %cst_20 = arith.constant 0.000000e+00 : f32
    %66 = vector.shape_cast %65 : vector<1x256xi1> to vector<1x256xi1>
    %67 = vector.broadcast %66 : vector<1x256xi1> to vector<4x256xi1>
    %68 = vector.broadcast %cst_20 : f32 to vector<4x256xf32>
    %69 = arith.select %67, %60, %68 : vector<4x256xi1>, vector<4x256xf32>
    %70 = vector.extract_strided_slice %2 {offsets = [0, 3], sizes = [4, 1], strides = [1, 1]} : vector<4x9xf32> to vector<4x1xf32>
    %71 = vector.broadcast %70 : vector<4x1xf32> to vector<4x256xf32>
    %72 = arith.mulf %69, %71 : vector<4x256xf32>
    %73 = arith.addf %59, %72 : vector<4x256xf32>
    %74 = vector.extract_strided_slice %2 {offsets = [0, 4], sizes = [4, 1], strides = [1, 1]} : vector<4x9xf32> to vector<4x1xf32>
    %75 = vector.broadcast %74 : vector<4x1xf32> to vector<4x256xf32>
    %76 = arith.mulf %1, %75 : vector<4x256xf32>
    %77 = arith.addf %73, %76 : vector<4x256xf32>
    %c255_i32 = arith.constant 255 : i32
    %78 = tpu.dynamic_rotate %1 by %c255_i32 dim 1 : vector<4x256xf32>, i32 -> vector<4x256xf32>
    %c-1_i32_21 = arith.constant -1 : i32
    %79 = vector.broadcast %c-1_i32_21 : i32 to vector<1x256xi32>
    %80 = arith.cmpi sge, %4, %79 : vector<1x256xi32>
    %c14_i32_22 = arith.constant 14 : i32
    %81 = vector.broadcast %c14_i32_22 : i32 to vector<1x256xi32>
    %82 = arith.cmpi sle, %4, %81 : vector<1x256xi32>
    %83 = arith.andi %80, %82 : vector<1x256xi1>
    %cst_23 = arith.constant 0.000000e+00 : f32
    %84 = vector.shape_cast %83 : vector<1x256xi1> to vector<1x256xi1>
    %85 = vector.broadcast %84 : vector<1x256xi1> to vector<4x256xi1>
    %86 = vector.broadcast %cst_23 : f32 to vector<4x256xf32>
    %87 = arith.select %85, %78, %86 : vector<4x256xi1>, vector<4x256xf32>
    %88 = vector.extract_strided_slice %2 {offsets = [0, 5], sizes = [4, 1], strides = [1, 1]} : vector<4x9xf32> to vector<4x1xf32>
    %89 = vector.broadcast %88 : vector<4x1xf32> to vector<4x256xf32>
    %90 = arith.mulf %87, %89 : vector<4x256xf32>
    %91 = arith.addf %77, %90 : vector<4x256xf32>
    %c241_i32 = arith.constant 241 : i32
    %92 = tpu.dynamic_rotate %1 by %c241_i32 dim 1 : vector<4x256xf32>, i32 -> vector<4x256xf32>
    %c-1_i32_24 = arith.constant -1 : i32
    %93 = vector.broadcast %c-1_i32_24 : i32 to vector<1x256xi32>
    %94 = arith.cmpi sge, %3, %93 : vector<1x256xi32>
    %c14_i32_25 = arith.constant 14 : i32
    %95 = vector.broadcast %c14_i32_25 : i32 to vector<1x256xi32>
    %96 = arith.cmpi sle, %3, %95 : vector<1x256xi32>
    %97 = arith.andi %94, %96 : vector<1x256xi1>
    %c1_i32_26 = arith.constant 1 : i32
    %98 = vector.broadcast %c1_i32_26 : i32 to vector<1x256xi32>
    %99 = arith.cmpi sge, %4, %98 : vector<1x256xi32>
    %c16_i32_27 = arith.constant 16 : i32
    %100 = vector.broadcast %c16_i32_27 : i32 to vector<1x256xi32>
    %101 = arith.cmpi sle, %4, %100 : vector<1x256xi32>
    %102 = arith.andi %99, %101 : vector<1x256xi1>
    %103 = arith.andi %97, %102 : vector<1x256xi1>
    %cst_28 = arith.constant 0.000000e+00 : f32
    %104 = vector.shape_cast %103 : vector<1x256xi1> to vector<1x256xi1>
    %105 = vector.broadcast %104 : vector<1x256xi1> to vector<4x256xi1>
    %106 = vector.broadcast %cst_28 : f32 to vector<4x256xf32>
    %107 = arith.select %105, %92, %106 : vector<4x256xi1>, vector<4x256xf32>
    %108 = vector.extract_strided_slice %2 {offsets = [0, 6], sizes = [4, 1], strides = [1, 1]} : vector<4x9xf32> to vector<4x1xf32>
    %109 = vector.broadcast %108 : vector<4x1xf32> to vector<4x256xf32>
    %110 = arith.mulf %107, %109 : vector<4x256xf32>
    %111 = arith.addf %91, %110 : vector<4x256xf32>
    %c240_i32 = arith.constant 240 : i32
    %112 = tpu.dynamic_rotate %1 by %c240_i32 dim 1 : vector<4x256xf32>, i32 -> vector<4x256xf32>
    %c-1_i32_29 = arith.constant -1 : i32
    %113 = vector.broadcast %c-1_i32_29 : i32 to vector<1x256xi32>
    %114 = arith.cmpi sge, %3, %113 : vector<1x256xi32>
    %c14_i32_30 = arith.constant 14 : i32
    %115 = vector.broadcast %c14_i32_30 : i32 to vector<1x256xi32>
    %116 = arith.cmpi sle, %3, %115 : vector<1x256xi32>
    %117 = arith.andi %114, %116 : vector<1x256xi1>
    %cst_31 = arith.constant 0.000000e+00 : f32
    %118 = vector.shape_cast %117 : vector<1x256xi1> to vector<1x256xi1>
    %119 = vector.broadcast %118 : vector<1x256xi1> to vector<4x256xi1>
    %120 = vector.broadcast %cst_31 : f32 to vector<4x256xf32>
    %121 = arith.select %119, %112, %120 : vector<4x256xi1>, vector<4x256xf32>
    %122 = vector.extract_strided_slice %2 {offsets = [0, 7], sizes = [4, 1], strides = [1, 1]} : vector<4x9xf32> to vector<4x1xf32>
    %123 = vector.broadcast %122 : vector<4x1xf32> to vector<4x256xf32>
    %124 = arith.mulf %121, %123 : vector<4x256xf32>
    %125 = arith.addf %111, %124 : vector<4x256xf32>
    %c239_i32 = arith.constant 239 : i32
    %126 = tpu.dynamic_rotate %1 by %c239_i32 dim 1 : vector<4x256xf32>, i32 -> vector<4x256xf32>
    %c-1_i32_32 = arith.constant -1 : i32
    %127 = vector.broadcast %c-1_i32_32 : i32 to vector<1x256xi32>
    %128 = arith.cmpi sge, %3, %127 : vector<1x256xi32>
    %c14_i32_33 = arith.constant 14 : i32
    %129 = vector.broadcast %c14_i32_33 : i32 to vector<1x256xi32>
    %130 = arith.cmpi sle, %3, %129 : vector<1x256xi32>
    %131 = arith.andi %128, %130 : vector<1x256xi1>
    %c-1_i32_34 = arith.constant -1 : i32
    %132 = vector.broadcast %c-1_i32_34 : i32 to vector<1x256xi32>
    %133 = arith.cmpi sge, %4, %132 : vector<1x256xi32>
    %c14_i32_35 = arith.constant 14 : i32
    %134 = vector.broadcast %c14_i32_35 : i32 to vector<1x256xi32>
    %135 = arith.cmpi sle, %4, %134 : vector<1x256xi32>
    %136 = arith.andi %133, %135 : vector<1x256xi1>
    %137 = arith.andi %131, %136 : vector<1x256xi1>
    %cst_36 = arith.constant 0.000000e+00 : f32
    %138 = vector.shape_cast %137 : vector<1x256xi1> to vector<1x256xi1>
    %139 = vector.broadcast %138 : vector<1x256xi1> to vector<4x256xi1>
    %140 = vector.broadcast %cst_36 : f32 to vector<4x256xf32>
    %141 = arith.select %139, %126, %140 : vector<4x256xi1>, vector<4x256xf32>
    %142 = vector.extract_strided_slice %2 {offsets = [0, 8], sizes = [4, 1], strides = [1, 1]} : vector<4x9xf32> to vector<4x1xf32>
    %143 = vector.broadcast %142 : vector<4x1xf32> to vector<4x256xf32>
    %144 = arith.mulf %141, %143 : vector<4x256xf32>
    %145 = arith.addf %125, %144 : vector<4x256xf32>
    %c0_37 = arith.constant 0 : index
    %c0_38 = arith.constant 0 : index
    %146 = vector.load %arg4[%c0_37, %c0_38] : memref<4x1xf32, #tpu.memory_space<vmem>>, vector<4x1xf32>
    %147 = vector.broadcast %146 : vector<4x1xf32> to vector<4x256xf32>
    %148 = arith.addf %145, %147 : vector<4x256xf32>
    %cst_39 = arith.constant 0.000000e+00 : f32
    %149 = vector.broadcast %cst_39 : f32 to vector<4x256xf32>
    %150 = arith.maximumf %148, %149 : vector<4x256xf32>
    %cst_40 = arith.constant dense<0.000000e+00> : vector<4xf32>
    %151 = vector.multi_reduction <add>, %150, %cst_40 [1] : vector<4x256xf32> to vector<4xf32>
    %152 = vector.shape_cast %151 : vector<4xf32> to vector<4x1xf32>
    %cst_41 = arith.constant 3.906250e-03 : f32
    %153 = vector.broadcast %cst_41 : f32 to vector<4x1xf32>
    %154 = arith.mulf %152, %153 : vector<4x1xf32>
    %c0_42 = arith.constant 0 : index
    %c0_43 = arith.constant 0 : index
    %155 = vector.load %arg5[%c0_42, %c0_43] : memref<4x2xf32, #tpu.memory_space<vmem>>, vector<4x2xf32>
    %156 = vector.broadcast %154 : vector<4x1xf32> to vector<4x2xf32>
    %157 = arith.mulf %155, %156 : vector<4x2xf32>
    %cst_44 = arith.constant dense<0.000000e+00> : vector<2xf32>
    %158 = vector.multi_reduction <add>, %157, %cst_44 [0] : vector<4x2xf32> to vector<2xf32>
    %159 = vector.shape_cast %158 : vector<2xf32> to vector<1x2xf32>
    %c0_45 = arith.constant 0 : index
    %c0_46 = arith.constant 0 : index
    %160 = vector.load %arg6[%c0_45, %c0_46] : memref<1x2xf32, #tpu.memory_space<vmem>>, vector<1x2xf32>
    %161 = arith.addf %159, %160 : vector<1x2xf32>
    %cst_47 = arith.constant 0.000000e+00 : f32
    %162 = vector.broadcast %cst_47 : f32 to vector<1x2xf32>
    %163 = arith.maximumf %161, %162 : vector<1x2xf32>
    %c0_48 = arith.constant 0 : index
    %c0_49 = arith.constant 0 : index
    %164 = vector.load %arg7[%c0_48, %c0_49] : memref<4x2xf32, #tpu.memory_space<vmem>>, vector<4x2xf32>
    %165 = vector.broadcast %163 : vector<1x2xf32> to vector<4x2xf32>
    %166 = arith.mulf %164, %165 : vector<4x2xf32>
    %cst_50 = arith.constant dense<0.000000e+00> : vector<4xf32>
    %167 = vector.multi_reduction <add>, %166, %cst_50 [1] : vector<4x2xf32> to vector<4xf32>
    %168 = vector.shape_cast %167 : vector<4xf32> to vector<4x1xf32>
    %c0_51 = arith.constant 0 : index
    %c0_52 = arith.constant 0 : index
    %169 = vector.load %arg8[%c0_51, %c0_52] : memref<4x1xf32, #tpu.memory_space<vmem>>, vector<4x1xf32>
    %170 = arith.addf %168, %169 : vector<4x1xf32>
    %171 = arith.negf %170 : vector<4x1xf32>
    %172 = math.exp %171 : vector<4x1xf32>
    %cst_53 = arith.constant 1.000000e+00 : f32
    %173 = vector.broadcast %cst_53 : f32 to vector<4x1xf32>
    %174 = arith.addf %173, %172 : vector<4x1xf32>
    %175 = arith.divf %173, %174 : vector<4x1xf32>
    %176 = vector.broadcast %175 : vector<4x1xf32> to vector<4x256xf32>
    %177 = arith.mulf %150, %176 : vector<4x256xf32>
    %c0_54 = arith.constant 0 : index
    %c0_55 = arith.constant 0 : index
    %178 = vector.load %arg9[%c0_54, %c0_55] : memref<8x4xf32, #tpu.memory_space<vmem>>, vector<8x4xf32>
    %cst_56 = arith.constant 0.000000e+00 : f32
    %179 = vector.broadcast %cst_56 : f32 to vector<8x256xf32>
    %180 = vector.extract_strided_slice %178 {offsets = [0, 0], sizes = [8, 1], strides = [1, 1]} : vector<8x4xf32> to vector<8x1xf32>
    %181 = vector.extract_strided_slice %177 {offsets = [0, 0], sizes = [1, 256], strides = [1, 1]} : vector<4x256xf32> to vector<1x256xf32>
    %182 = vector.broadcast %180 : vector<8x1xf32> to vector<8x256xf32>
    %183 = vector.broadcast %181 : vector<1x256xf32> to vector<8x256xf32>
    %184 = arith.mulf %182, %183 : vector<8x256xf32>
    %185 = arith.addf %179, %184 : vector<8x256xf32>
    %186 = vector.extract_strided_slice %178 {offsets = [0, 1], sizes = [8, 1], strides = [1, 1]} : vector<8x4xf32> to vector<8x1xf32>
    %187 = vector.extract_strided_slice %177 {offsets = [1, 0], sizes = [1, 256], strides = [1, 1]} : vector<4x256xf32> to vector<1x256xf32>
    %188 = vector.broadcast %186 : vector<8x1xf32> to vector<8x256xf32>
    %189 = vector.broadcast %187 : vector<1x256xf32> to vector<8x256xf32>
    %190 = arith.mulf %188, %189 : vector<8x256xf32>
    %191 = arith.addf %185, %190 : vector<8x256xf32>
    %192 = vector.extract_strided_slice %178 {offsets = [0, 2], sizes = [8, 1], strides = [1, 1]} : vector<8x4xf32> to vector<8x1xf32>
    %193 = vector.extract_strided_slice %177 {offsets = [2, 0], sizes = [1, 256], strides = [1, 1]} : vector<4x256xf32> to vector<1x256xf32>
    %194 = vector.broadcast %192 : vector<8x1xf32> to vector<8x256xf32>
    %195 = vector.broadcast %193 : vector<1x256xf32> to vector<8x256xf32>
    %196 = arith.mulf %194, %195 : vector<8x256xf32>
    %197 = arith.addf %191, %196 : vector<8x256xf32>
    %198 = vector.extract_strided_slice %178 {offsets = [0, 3], sizes = [8, 1], strides = [1, 1]} : vector<8x4xf32> to vector<8x1xf32>
    %199 = vector.extract_strided_slice %177 {offsets = [3, 0], sizes = [1, 256], strides = [1, 1]} : vector<4x256xf32> to vector<1x256xf32>
    %200 = vector.broadcast %198 : vector<8x1xf32> to vector<8x256xf32>
    %201 = vector.broadcast %199 : vector<1x256xf32> to vector<8x256xf32>
    %202 = arith.mulf %200, %201 : vector<8x256xf32>
    %203 = arith.addf %197, %202 : vector<8x256xf32>
    %c0_57 = arith.constant 0 : index
    %c0_58 = arith.constant 0 : index
    %204 = vector.load %arg10[%c0_57, %c0_58] : memref<8x1xf32, #tpu.memory_space<vmem>>, vector<8x1xf32>
    %205 = vector.broadcast %204 : vector<8x1xf32> to vector<8x256xf32>
    %206 = arith.addf %203, %205 : vector<8x256xf32>
    %207 = vector.shape_cast %206 : vector<8x256xf32> to vector<1x8x256xf32>
    %c0_59 = arith.constant 0 : index
    %c0_60 = arith.constant 0 : index
    %c0_61 = arith.constant 0 : index
    %208 = vector.load %arg11[%c0_59, %c0_60, %c0_61] : memref<1x8x256xf32, #tpu.memory_space<vmem>>, vector<1x8x256xf32>
    tpu.vector_store %arg11[%c0_59, %c0_60, %c0_61], %207 {strides = array<i32>} : memref<1x8x256xf32, #tpu.memory_space<vmem>>, vector<1x8x256xf32>,
    return
  }
  func.func @transform_0(%arg0: i32) -> (i32, i32, i32) {
    %c0_i32 = arith.constant 0 : i32
    %c0_i32_0 = arith.constant 0 : i32
    %c0_i32_1 = arith.constant 0 : i32
    return %arg0, %c0_i32, %c0_i32_0 : i32, i32, i32
  }
  func.func @transform_1(%arg0: i32) -> (i32, i32) {
    %c0_i32 = arith.constant 0 : i32
    %c0_i32_0 = arith.constant 0 : i32
    %c0_i32_1 = arith.constant 0 : i32
    return %c0_i32, %c0_i32_0 : i32, i32
  }
  func.func @transform_2(%arg0: i32) -> (i32, i32) {
    %c0_i32 = arith.constant 0 : i32
    %c0_i32_0 = arith.constant 0 : i32
    %c0_i32_1 = arith.constant 0 : i32
    return %c0_i32, %c0_i32_0 : i32, i32
  }
  func.func @transform_3(%arg0: i32) -> (i32, i32) {
    %c0_i32 = arith.constant 0 : i32
    %c0_i32_0 = arith.constant 0 : i32
    %c0_i32_1 = arith.constant 0 : i32
    return %c0_i32, %c0_i32_0 : i32, i32
  }
  func.func @transform_4(%arg0: i32) -> (i32, i32) {
    %c0_i32 = arith.constant 0 : i32
    %c0_i32_0 = arith.constant 0 : i32
    %c0_i32_1 = arith.constant 0 : i32
    return %c0_i32, %c0_i32_0 : i32, i32
  }
  func.func @transform_5(%arg0: i32) -> (i32, i32) {
    %c0_i32 = arith.constant 0 : i32
    %c0_i32_0 = arith.constant 0 : i32
    %c0_i32_1 = arith.constant 0 : i32
    return %c0_i32, %c0_i32_0 : i32, i32
  }
  func.func @transform_6(%arg0: i32) -> (i32, i32) {
    %c0_i32 = arith.constant 0 : i32
    %c0_i32_0 = arith.constant 0 : i32
    %c0_i32_1 = arith.constant 0 : i32
    return %c0_i32, %c0_i32_0 : i32, i32
  }
  func.func @transform_7(%arg0: i32) -> (i32, i32) {
    %c0_i32 = arith.constant 0 : i32
    %c0_i32_0 = arith.constant 0 : i32
    %c0_i32_1 = arith.constant 0 : i32
    return %c0_i32, %c0_i32_0 : i32, i32
  }
  func.func @transform_8(%arg0: i32) -> (i32, i32) {
    %c0_i32 = arith.constant 0 : i32
    %c0_i32_0 = arith.constant 0 : i32
    %c0_i32_1 = arith.constant 0 : i32
    return %c0_i32, %c0_i32_0 : i32, i32
  }
  func.func @transform_9(%arg0: i32) -> (i32, i32) {
    %c0_i32 = arith.constant 0 : i32
    %c0_i32_0 = arith.constant 0 : i32
    %c0_i32_1 = arith.constant 0 : i32
    return %c0_i32, %c0_i32_0 : i32, i32
  }
  func.func @transform_10(%arg0: i32) -> (i32, i32, i32) {
    %c0_i32 = arith.constant 0 : i32
    %c0_i32_0 = arith.constant 0 : i32
    %c0_i32_1 = arith.constant 0 : i32
    return %arg0, %c0_i32, %c0_i32_0 : i32, i32, i32
  }
}

</mosaic_0001>

<bundles_post_ra>
// kernel: dsc_forward.1
= control target key start
LH: loop header
LB: loop body
LE: loop exit
PB: predicated region body
PF: predicated region fallthrough
CT: control target
= control target key end

     0   :  { %s930_s13 = smov 0   ;;  %s1199_s0 = inlined_call_operand.vmem [shape: f32[2,4,256], index: 0, kind: input, shape index: {}]   ;;  %s1200_s1 = inlined_call_operand.vmem [shape: s32[2,256], index: 1, kind: input, shape index: {}]   ;;  %s1201_s2 = inlined_call_operand.vmem [shape: f32[4,9], index: 2, kind: input, shape index: {}]   ;;  %s1202_s3 = inlined_call_operand.vmem [shape: f32[4,1], index: 3, kind: input, shape index: {}]   ;;  %s1203_s4 = inlined_call_operand.vmem [shape: f32[4,2], index: 4, kind: input, shape index: {}]   ;;  %s1204_s5 = inlined_call_operand.vmem [shape: f32[1,2], index: 5, kind: input, shape index: {}]   ;;  %s1205_s6 = inlined_call_operand.vmem [shape: f32[4,2], index: 6, kind: input, shape index: {}]   ;;  %s1206_s7 = inlined_call_operand.vmem [shape: f32[4,1], index: 7, kind: input, shape index: {}]   ;;  %s1207_s8 = inlined_call_operand.vmem [shape: f32[8,4], index: 8, kind: input, shape index: {}]   ;;  %s1208_s9 = inlined_call_operand.vmem [shape: f32[8,1], index: 9, kind: input, shape index: {}]   ;;  %s1209_s10 = inlined_call_operand.vmem [shape: f32[2,8,256], index: 10, kind: output, shape index: {}]  }
   0x1 LB: > { %s789_s14 = sadd.s32 4294967295, %s855_s13   ;;  %p793_p0 = scmp.ge.s32.totalorder %s855_s13, 1  ;;  %s855_s13 = sphi %s930_s13, %s20_s13  }
   0x2   : > { %p312_p1 = scmp.lt.s32.totalorder %s855_s13, 3 }
   0x4   : > { %p313_p2 = pnand %p793_p0, %p312_p1 }
   0x5   : > { %p350_p3 = scmp.lt.s32.totalorder (!%p313_p2), %s789_s14, 1  ;;  %s862_s21 = smov (!%p313_p2), 17  }
   0x6   : > { %316 = sbr.rel (%p313_p2) target bundleno = 701 (0x2bd), region = 60  ;;  %s863_s22 = smov (!%p313_p2), 16  }
   0x7   : > { %s864_s23 = smov (!%p313_p2), 15   ;;  %s865_s24 = smov (!%p313_p2), 1  }
   0x8   : > { %s871_s25 = smov (!%p313_p2), 127   ;;  %s872_s26 = smov (!%p313_p2), 113  }
   0x9   : > { %s873_s27 = smov (!%p313_p2), 112   ;;  %s874_s28 = smov (!%p313_p2), 111  }
   0xb   : > { %v941_v0 = vld [vmem:[%s1201_s2] sm:$0xf]  ;;  %v857_v1 = vmov 4   ;;  %v858_v2 = vmov 2   ;;  %s1251_s14 = smov (!%p350_p3, %s789_s14), 1  ;;  %v859_v3 = vmov 0   ;;  %v375_v51 = vlaneseq }
   0xc   : > { %830 = vset.pattern.permute.xlu0 %v857_v1  ;;  %833 = vset.pattern.permute.xlu1 %v858_v2  ;;  %s802_s17 = sshll.u32 %s1251_s14, 3  ;;  %v860_v5 = vmov 1   ;;  %v861_v6 = vmov 3   ;;  %v866_v15 = vmov 5   ;;  %v867_v16 = vmov 6   ;;  %v984_v36 = vld [vmem:[%s1207_s8] sm:$0xff] }
   0xd   : > { %489 = vperm.xlu0 %830, %v941_v0   ;;  %454 = vperm.xlu1 %833, %v941_v0   ;;  %s354_s20 = scalar_lea.vmem %s1199_s0, %s802_s17  ;;  %v868_v17 = vmov 839922192   ;;  %v869_v22 = vmov 7   ;;  %v870_v26 = vmov 8   ;;  %v618_v35 = vld [vmem:[%s1202_s3] sm:$0xf] }
   0xe   : > { %831 = vset.pattern.permute.xlu2 %v859_v3  ;;  %v954_v4 = vld [vmem:[%s354_s20] sm:$0xff]  ;;  %v492_v18 = vunpack.c.l.s4 %v868_v17  ;;  %v1021_v55 = vand.u32 127, %v375_v51  ;;  %s803_s29 = sshll.u32 %s1251_s14, 4 }
   0xf   : > { %396 = vperm.xlu2 %831, %v941_v0   ;;  %366 = vst [vmem:[#allocation1] ss:$2 sm:$0xff] %v954_v4  ;;  %v362_v44 = vld [vmem:[%s1200_s1] ss:$2 sm:$0x3]  ;;  %s359_s12 = scalar_lea.vmem %s1209_s10, %s803_s29 }
  0x10   : > { %v493_v19 = vunpack.c.0.s8 %v492_v18  ;;  %v798_v45 = vld [vmem:[%s1200_s1 + $0x1] ss:$2 sm:$0x3]  ;;  %vm380_vm0 = vcmp.ge.s32.totalorder %v362_v44, 1  ;;  %vm381_vm1 = vcmp.le.s32.totalorder %v362_v44, 16  ;;  %vm377_vm11 = vcmp.lt.s32.totalorder %v1021_v55, 17 }
  0x11   : > { %vm383_vm2 = vcmp.ge.s32.totalorder %v798_v45, 1  ;;  %vm384_vm3 = vcmp.le.s32.totalorder %v798_v45, 16  ;;  %vm1002_vm4 = vmand %vm380_vm0, %vm381_vm1  ;;  %vm442_vm6 = vcmp.ge.s32.totalorder %v798_v45, 4294967295  ;;  %vm443_vm7 = vcmp.le.s32.totalorder %v798_v45, 14 }
  0x12   : > { %vm1006_vm5 = vmand %vm383_vm2, %vm384_vm3  ;;  %v415_v56 = vsel %vm1002_vm4, 1, %v859_v3  ;;  %vm412_vm12 = vcmp.lt.s32.totalorder %v1021_v55, 16  ;;  %vm439_vm1 = vcmp.lt.s32.totalorder %v1021_v55, 15  ;;  %vm544_vm2 = vcmp.ge.s32.totalorder %v362_v44, 4294967295 }
  0x13   : > { %vm386_vm8 = vmand %vm1002_vm4, %vm1006_vm5  ;;  %v416_v60 = vperm.slane %v415_v56, 0  ;;  %v417_v62 = vperm.slane %v415_v56, 1  ;;  %vm545_vm3 = vcmp.le.s32.totalorder %v362_v44, 14 }
  0x14   : > { %vm1016_vm9 = vmand %vm442_vm6, %vm443_vm7  ;;  %v387_v54 = vsel %vm386_vm8, 1, %v859_v3  ;;  %vm470_vm8 = vcmp.lt.s32.totalorder %v1021_v55, 1 }
  0x15   : > { %832 = vset.pattern.permute.xlu0 %v860_v5  ;;  %834 = vset.pattern.permute.xlu1 %v861_v6  ;;  %vm445_vm10 = vmand %vm1002_vm4, %vm1016_vm9  ;;  %v388_v58 = vperm.slane %v387_v54, 0  ;;  %v389_v59 = vperm.slane %v387_v54, 1  ;;  %vm1045_vm15 = vcmp.eq.s32.totalorder %v416_v60, 1  ;;  %vm1049_vm0 = vcmp.eq.s32.totalorder %v417_v62, 1 }
  0x16   : > { %v368_v7 = vld.sshfl [vmem:[#allocation1 + $0x8] sm:$0xff pattern:$0x75316420]  ;;  %v367_v8 = vld.sshfl [vmem:[#allocation1] sm:$0xff pattern:$0x75316420]  ;;  %vm1073_vm7 = vmand %vm544_vm2, %vm545_vm3 }
  0x17   : > { %373 = vrot.lane.b32.xlu1 %v368_v7, %s862_s21  ;;  %371 = vrot.lane.b32.xlu0 %v367_v8, %s862_s21  ;;  %403 = vst [vmem:[#allocation1] ss:$2 sm:$0xff] %v954_v4  ;;  %v446_v63 = vsel %vm445_vm10, 1, %v859_v3  ;;  %vm1037_vm13 = vcmp.eq.s32.totalorder %v388_v58, 1  ;;  %vm1041_vm14 = vcmp.eq.s32.totalorder %v389_v59, 1  ;;  %vm547_vm10 = vmand %vm1073_vm7, %vm1006_vm5  ;;  %v575_v59 = vsel %vm1073_vm7, 1, %v859_v3 }
  0x18   : > { %v447_v8 = vperm.slane %v446_v63, 0  ;;  %v548_v47 = vsel %vm547_vm10, 1, %v859_v3  ;;  %v577_v7 = vperm.slane %v575_v59, 1  ;;  %vm572_vm2 = vcmp.lt.s32.totalorder %v1021_v55, 112 }
  0x19   : > { %v549_v58 = vperm.slane %v548_v47, 0  ;;  %v550_v62 = vperm.slane %v548_v47, 1  ;;  %vm628_vm10 = vcmask 1043456  }
  0x1a   : > { %vm1065_vm4 = vcmp.eq.s32.totalorder %v447_v8, 1 }
  0x1b   : > { %vm1132_vm3 = vcmp.eq.s32.totalorder %v550_v62, 1 }
  0x1e   : > { %v404_v9 = vld.sshfl [vmem:[#allocation1] sm:$0xff pattern:$0x75316420]  ;;  %v405_v10 = vld.sshfl [vmem:[#allocation1 + $0x8] sm:$0xff pattern:$0x75316420] }
  0x1f   : > { %408 = vrot.lane.b32.xlu1 %v404_v9, %s863_s22  ;;  %430 = vst [vmem:[#allocation1] ss:$2 sm:$0xff] %v954_v4  ;;  %423 = vperm.xlu0 %832, %v941_v0  }
  0x20   : > { %410 = vrot.lane.b32.xlu2 %v405_v10, %s863_s22 }
  0x26   : > { %v431_v11 = vld.sshfl [vmem:[#allocation1] sm:$0xff pattern:$0x75316420]  ;;  %v432_v12 = vld.sshfl [vmem:[#allocation1 + $0x8] sm:$0xff pattern:$0x75316420] }
  0x27   : > { %435 = vrot.lane.b32.xlu1 %v431_v11, %s864_s23  ;;  %461 = vst [vmem:[#allocation1] ss:$2 sm:$0xff] %v954_v4  ;;  %844 = vset.pattern.permute.xlu0 %v859_v3 }
  0x28   : > { %437 = vrot.lane.b32.xlu2 %v432_v12, %s864_s23  ;;  %v448_v12 = vperm.slane %v446_v63, 1 }
  0x2a   : > { %vm1069_vm6 = vcmp.eq.s32.totalorder %v448_v12, 1 }
  0x2e   : > { %v463_v13 = vld.sshfl [vmem:[#allocation1 + $0x8] sm:$0xff pattern:$0x75316420]  ;;  %v462_v14 = vld.sshfl [vmem:[#allocation1] sm:$0xff pattern:$0x75316420] }
  0x2f   : > { %468 = vrot.lane.b32.xlu0 %v463_v13, %s865_s24  ;;  %481 = vperm.xlu1 %834, %v941_v0   ;;  %v473_v13 = vsel %vm1006_vm5, 1, %v859_v3  ;;  %vm514_vm5 = vcmp.lt.s32.totalorder %v1021_v55, 127 }
  0x30   : > { %466 = vrot.lane.b32.xlu2 %v462_v14, %s865_s24 }
  0x37   : > { %835 = vset.pattern.permute.xlu1 %v866_v15 }
  0x38   : > { %525 = vperm.xlu1 %835, %v941_v0  }
  0x40   : > { %836 = vset.pattern.permute.xlu1 %v867_v16 }
  0x41   : > { %556 = vperm.xlu1 %836, %v941_v0  }
  0x49   : > { %837 = vset.pattern.permute.xlu1 %v869_v22 }
  0x4a   : > { %583 = vperm.xlu1 %837, %v941_v0  }
  0x52   : > { %838 = vset.pattern.permute.xlu1 %v870_v26  ;;  %v474_v26 = vperm.slane %v473_v13, 0 }
  0x53   : > { %611 = vperm.xlu1 %838, %v941_v0  }
  0x69   : > { %v993_v38 = vpop.permute.xlu2 %396 }
  0x7a   : > { %v411_v40 = vpop.permute.xlu2 %410 }
  0x7f   : > { %v490_v20 = vpop.permute.xlu0 %489  ;;  %v991_v37 = vpop.permute.xlu1 %454 }
  0x80   : > { %v494_v21 = vperm.slane %v490_v20, %v493_v19 }
  0x82   : > { %v496_v23 = vmul.f32 %v494_v21, %v954_v4  ;;  %v438_v43 = vpop.permute.xlu2 %437 }
  0x84   : > { %498 = vst [vmem:[#allocation1] ss:$2 sm:$0xff] %v496_v23 }
  0x89   : > { %v374_v39 = vpop.permute.xlu1 %373  ;;  %v372_v42 = vpop.permute.xlu0 %371 }
  0x8a   : > { %v467_v50 = vpop.permute.xlu2 %466  ;;  %v378_v9 = vsel %vm377_vm11, %v372_v42, %v374_v39 }
  0x8b   : > { %v969_v24 = vld.sshfl [vmem:[#allocation1] sm:$0xff pattern:$0x75316420]  ;;  %v971_v25 = vld.sshfl [vmem:[#allocation1 + $0x8] sm:$0xff pattern:$0x75316420] }
  0x8c   : > { %505 = vst [vmem:[#allocation1] ss:$2 sm:$0xff] %v954_v4  ;;  %v393_v16 = vsel %vm1041_vm14, %v378_v9, 0.0 }
  0x91   : > { %v409_v41 = vpop.permute.xlu1 %408  ;;  %v424_v49 = vpop.permute.xlu0 %423 }
  0x92   : > { %v413_v10 = vsel %vm412_vm12, %v409_v41, %v411_v40 }
  0x93   : > { %v507_v27 = vld.sshfl [vmem:[#allocation1 + $0x8] sm:$0xff pattern:$0x75316420]  ;;  %v506_v28 = vld.sshfl [vmem:[#allocation1] sm:$0xff pattern:$0x75316420] }
  0x94   : > { %512 = vrot.lane.b32.xlu0 %v507_v27, %s871_s25  ;;  %510 = vrot.lane.b32.xlu2 %v506_v28, %s871_s25  ;;  %532 = vst [vmem:[#allocation1] ss:$2 sm:$0xff] %v954_v4  ;;  %v421_v17 = vsel %vm1049_vm0, %v413_v10, 0.0  ;;  %vm602_vm0 = vmand %vm1073_vm7, %vm1016_vm9 }
  0x95   : > { %v603_v12 = vsel %vm602_vm0, 1, %v859_v3 }
  0x99   : > { %v436_v46 = vpop.permute.xlu1 %435 }
  0x9a   : > { %v440_v22 = vsel %vm439_vm1, %v436_v46, %v438_v43  ;;  %v441_v23 = vsel %vm439_vm1, %v438_v43, %v436_v46  ;;  %vm1127_vm1 = vcmp.eq.s32.totalorder %v549_v58, 1 }
  0x9b   : > { %v534_v29 = vld.sshfl [vmem:[#allocation1 + $0x8] sm:$0xff pattern:$0x75316420]  ;;  %v533_v30 = vld.sshfl [vmem:[#allocation1] sm:$0xff pattern:$0x75316420] }
  0x9c   : > { %539 = vrot.lane.b32.xlu0 %v534_v29, %s872_s26  ;;  %537 = vrot.lane.b32.xlu2 %v533_v30, %s872_s26  ;;  %563 = vst [vmem:[#allocation1] ss:$2 sm:$0xff] %v954_v4  ;;  %v475_v30 = vperm.slane %v473_v13, 1 }
  0xa1   : > { %v1014_v52 = vpop.permute.xlu1 %481  ;;  %v469_v61 = vpop.permute.xlu0 %468 }
  0xa3   : > { %v565_v31 = vld.sshfl [vmem:[#allocation1 + $0x8] sm:$0xff pattern:$0x75316420]  ;;  %v564_v32 = vld.sshfl [vmem:[#allocation1] sm:$0xff pattern:$0x75316420] }
  0xa4   : > { %570 = vrot.lane.b32.xlu0 %v565_v31, %s873_s27  ;;  %568 = vrot.lane.b32.xlu2 %v564_v32, %s873_s27  ;;  %590 = vst [vmem:[#allocation1] ss:$2 sm:$0xff] %v954_v4  ;;  %v379_v4 = vsel %vm377_vm11, %v374_v39, %v372_v42  ;;  %v400_v31 = vmul.f32 %v993_v38, %v393_v16  ;;  %vm1088_vm11 = vcmp.eq.s32.totalorder %v474_v26, 1  ;;  %v605_v26 = vperm.slane %v603_v12, 1 }
  0xa5   : > { %v392_v14 = vsel %vm1037_vm13, %v379_v4, 0.0  ;;  %v427_v32 = vmul.f32 %v424_v49, %v421_v17  ;;  %v472_v39 = vsel %vm470_vm8, %v469_v61, %v467_v50  ;;  %v471_v42 = vsel %vm470_vm8, %v467_v50, %v469_v61 }
  0xa6   : > { %v399_v28 = vmul.f32 %v993_v38, %v392_v14  ;;  %v517_v38 = vsel %vm1016_vm9, 1, %v859_v3  ;;  %v478_v48 = vsel %vm1088_vm11, %v472_v39, 0.0  ;;  %vm1166_vm8 = vcmp.eq.s32.totalorder %v605_v26, 1 }
  0xa7   : > { %v429_v44 = vadd.f32 %v427_v32, %v400_v31  ;;  %v519_v51 = vperm.slane %v517_v38, 1  ;;  %v484_v61 = vmul.f32 %v1014_v52, %v478_v48  ;;  %vm637_vm11 = vcmask 11264  }
  0xa9   : > { %vm1116_vm14 = vcmp.eq.s32.totalorder %v519_v51, 1 }
  0xaa   : > { %v1035_v0 = vpop.permute.xlu1 %525 }
  0xab   : > { %v592_v33 = vld.sshfl [vmem:[#allocation1 + $0x8] sm:$0xff pattern:$0x75316420]  ;;  %v591_v34 = vld.sshfl [vmem:[#allocation1] sm:$0xff pattern:$0x75316420] }
  0xac   : > { %597 = vrot.lane.b32.xlu0 %v592_v33, %s874_s28  ;;  %595 = vrot.lane.b32.xlu2 %v591_v34, %s874_s28  ;;  %v451_v33 = vsel %vm1065_vm4, %v441_v23, 0.0  ;;  %v452_v34 = vsel %vm1069_vm6, %v440_v22, 0.0  ;;  %vm1145_vm4 = vcmp.eq.s32.totalorder %v577_v7, 1  ;;  %v604_v23 = vperm.slane %v603_v12, 0  ;;  %v645_v12 = vld [vmem:[%s1204_s5] sm:$0x1] }
  0xad   : > { %v457_v45 = vmul.f32 %v991_v37, %v451_v33  ;;  %v458_v46 = vmul.f32 %v991_v37, %v452_v34  ;;  %vm599_vm6 = vcmp.lt.s32.totalorder %v1021_v55, 111 }
  0xae   : > { %vm1162_vm7 = vcmp.eq.s32.totalorder %v604_v23, 1 }
  0xaf   : > { %v460_v60 = vadd.f32 %v458_v46, %v429_v44 }
  0xb4   : > { %621 = vperm.xlu2 %831, %v618_v35   ;;  %v557_v35 = vpop.permute.xlu1 %556 }
  0xbc   : > { %685 = vperm.xlu2 %831, %v984_v36   ;;  %v584_v9 = vpop.permute.xlu1 %583 }
  0xc4   : > { %839 = vset.pattern.permute.xlu2 %v860_v5  ;;  %v414_v5 = vsel %vm412_vm12, %v411_v40, %v409_v41  ;;  %vm1095_vm12 = vcmp.eq.s32.totalorder %v475_v30, 1 }
  0xc5   : > { %695 = vperm.xlu2 %839, %v984_v36   ;;  %v420_v15 = vsel %vm1045_vm15, %v414_v5, 0.0  ;;  %v479_v50 = vsel %vm1095_vm12, %v471_v42, 0.0  ;;  %vm541_vm15 = vcmp.lt.s32.totalorder %v1021_v55, 113 }
  0xc6   : > { %v426_v29 = vmul.f32 %v424_v49, %v420_v15  ;;  %v518_v49 = vperm.slane %v517_v38, 0  ;;  %v485_v63 = vmul.f32 %v1014_v52, %v479_v50  ;;  %v576_v52 = vperm.slane %v575_v59, 0 }
  0xc8   : > { %v428_v41 = vadd.f32 %v426_v29, %v399_v28  ;;  %vm1112_vm13 = vcmp.eq.s32.totalorder %v518_v49, 1  ;;  %v487_v14 = vadd.f32 %v485_v63, %v460_v60  ;;  %vm1141_vm9 = vcmp.eq.s32.totalorder %v576_v52, 1 }
  0xca   : > { %v459_v37 = vadd.f32 %v457_v45, %v428_v41  ;;  %v504_v33 = vadd.f32 %v971_v25, %v487_v14 }
  0xcc   : > { %v486_v13 = vadd.f32 %v484_v61, %v459_v37 }
  0xcd   : > { %840 = vset.pattern.permute.xlu2 %v858_v2  ;;  %v635_v2 = vld [vmem:[%s1203_s4] sm:$0xf] }
  0xce   : > { %705 = vperm.xlu2 %840, %v984_v36   ;;  %v503_v32 = vadd.f32 %v969_v24, %v486_v13  ;;  %v612_v24 = vpop.permute.xlu1 %611 }
  0xd6   : > { %841 = vset.pattern.permute.xlu2 %v859_v3 }
  0xee   : > { %v1030_v57 = vpop.permute.xlu2 %510 }
  0xf6   : > { %v538_v19 = vpop.permute.xlu2 %537 }
  0xfe   : > { %v569_v56 = vpop.permute.xlu2 %568 }
 0x106   : > { %v513_v20 = vpop.permute.xlu0 %512  ;;  %v596_v29 = vpop.permute.xlu2 %595 }
 0x107   : > { %v515_v4 = vsel %vm514_vm5, %v1030_v57, %v513_v20  ;;  %v516_v5 = vsel %vm514_vm5, %v513_v20, %v1030_v57  ;;  %v654_v20 = vld [vmem:[%s1206_s7] sm:$0xf] }
 0x108   : > { %v522_v57 = vsel %vm1112_vm13, %v515_v4, 0.0  ;;  %v523_v15 = vsel %vm1116_vm14, %v516_v5, 0.0 }
 0x109   : > { %v528_v27 = vmul.f32 %v1035_v0, %v522_v57  ;;  %v529_v28 = vmul.f32 %v1035_v0, %v523_v15  ;;  %v648_v15 = vld [vmem:[%s1205_s6] sm:$0xf] }
 0x10a   : > { %v724_v0 = vld [vmem:[%s1208_s9] sm:$0xff] }
 0x10b   : > { %v530_v38 = vadd.f32 %v528_v27, %v503_v32  ;;  %v531_v41 = vadd.f32 %v529_v28, %v504_v33 }
 0x10e   : > { %v540_v54 = vpop.permute.xlu0 %539  ;;  %v622_v58 = vpop.permute.xlu2 %621 }
 0x10f   : > { %v542_v53 = vsel %vm541_vm15, %v538_v19, %v540_v54  ;;  %v543_v11 = vsel %vm541_vm15, %v540_v54, %v538_v19 }
 0x110   : > { %v553_v19 = vsel %vm1127_vm1, %v542_v53, 0.0  ;;  %v554_v22 = vsel %vm1132_vm3, %v543_v11, 0.0 }
 0x111   : > { %v559_v34 = vmul.f32 %v557_v35, %v553_v19  ;;  %v560_v39 = vmul.f32 %v557_v35, %v554_v22 }
 0x113   : > { %v561_v45 = vadd.f32 %v559_v34, %v530_v38  ;;  %v562_v25 = vadd.f32 %v560_v39, %v531_v41 }
 0x116   : > { %v571_v16 = vpop.permute.xlu0 %570  ;;  %v686_v38 = vpop.permute.xlu2 %685 }
 0x117   : > { %v573_v17 = vsel %vm572_vm2, %v569_v56, %v571_v16  ;;  %v574_v18 = vsel %vm572_vm2, %v571_v16, %v569_v56 }
 0x118   : > { %v580_v30 = vsel %vm1141_vm9, %v573_v17, 0.0  ;;  %v581_v31 = vsel %vm1145_vm4, %v574_v18, 0.0 }
 0x119   : > { %v586_v42 = vmul.f32 %v584_v9, %v580_v30  ;;  %v587_v43 = vmul.f32 %v584_v9, %v581_v31 }
 0x11b   : > { %v588_v48 = vadd.f32 %v586_v42, %v561_v45  ;;  %v589_v49 = vadd.f32 %v587_v43, %v562_v25 }
 0x11e   : > { %v598_v44 = vpop.permute.xlu0 %597 }
 0x11f   : > { %v600_v46 = vsel %vm599_vm6, %v596_v29, %v598_v44  ;;  %v601_v35 = vsel %vm599_vm6, %v598_v44, %v596_v29  ;;  %v696_v41 = vpop.permute.xlu2 %695 }
 0x120   : > { %v608_v55 = vsel %vm1162_vm7, %v600_v46, 0.0  ;;  %v609_v47 = vsel %vm1166_vm8, %v601_v35, 0.0 }
 0x121   : > { %v614_v51 = vmul.f32 %v612_v24, %v608_v55  ;;  %v615_v54 = vmul.f32 %v612_v24, %v609_v47 }
 0x123   : > { %v616_v50 = vadd.f32 %v614_v51, %v588_v48  ;;  %v617_v56 = vadd.f32 %v615_v54, %v589_v49 }
 0x125   : > { %v624_v59 = vadd.f32 %v622_v58, %v616_v50  ;;  %v625_v37 = vadd.f32 %v622_v58, %v617_v56 }
 0x127   : > { %v626_v60 = vmax.f32 %v624_v59, 0.0  ;;  %v627_v61 = vmax.f32 %v625_v37, 0.0 }
 0x128   : > { %v706_v42 = vpop.permute.xlu2 %705 }
 0x129   : > { %v629_v62 = vsel %vm628_vm10, %v626_v60, 0.0  ;;  %v630_v63 = vsel %vm628_vm10, %v627_v61, 0.0 }
 0x12a   : > { %v631_v1 = vadd.f32 %v630_v63, %v629_v62 }
 0x12c   : > { %632 = vadd.xlane.f32.xlu0 %v631_v1 }
 0x19f   : > { %v633_v4 = vpop.xlane.xlu0 %632 }
 0x1a0   : > { %v634_v5 = vmul.f32 0.00390625, %v633_v4 }
 0x1a2   : > { %v636_v52 = vmul.f32 %v635_v2, %v634_v5 }
 0x1a4   : > { %v638_v7 = vsel %vm637_vm11, %v636_v52, 0.0 }
 0x1a5   : > { %v639_v8 = vrot.slane %v638_v7, 4 }
 0x1a7   : > { %v640_v9 = vadd.f32 %v639_v8, %v638_v7 }
 0x1a9   : > { %v641_v10 = vrot.slane %v640_v9, 2 }
 0x1ab   : > { %v642_v53 = vadd.f32 %v641_v10, %v640_v9 }
 0x1ad   : > { %v643_v11 = vrot.slane %v642_v53, 1 }
 0x1af   : > { %v644_v13 = vadd.f32 %v643_v11, %v642_v53 }
 0x1b1   : > { %v646_v14 = vadd.f32 %v645_v12, %v644_v13 }
 0x1b3   : > { %v647_v57 = vmax.f32 %v646_v14, 0.0 }
 0x1b5   : > { %v649_v16 = vperm.slane %v647_v57, 0 }
 0x1b7   : > { %v650_v17 = vmul.f32 %v649_v16, %v648_v15 }
 0x1b9   : > { %v651_v18 = vsel %vm637_vm11, %v650_v17, 0.0 }
 0x1ba   : > { %652 = vadd.xlane.f32.xlu1 %v651_v18 }
 0x22d   : > { %v653_v21 = vpop.xlane.xlu1 %652 }
 0x22e   : > { %v655_v19 = vadd.f32 %v654_v20, %v653_v21 }
 0x230   : > { %v799_v22 = vmul.f32 -1.442695, %v655_v19 }
 0x232   : > { %845 = vpow2.f32 %v799_v22 }
 0x238   : > { %v846_v23 = vpop.eup %845 }
 0x239   : > { %v659_v26 = vadd.f32 1.0, %v846_v23 }
 0x23b   : > { %847 = vrcp.f32 %v659_v26  ;;  %v671_v30 = vand.u32 2147483648, %v659_v26  ;;  %v669_v32 = vand.u32 2147483647, %v659_v26  ;;  %vm665_vm5 = vweird.f32 %v659_v26 }
 0x23d   : > { %v672_v34 = vor.u32 1.1754944e-38, %v671_v30  ;;  %vm670_vm14 = vcmp.eq.f32.partialorder %v669_v32, 8.507059e+37 }
 0x241   : > { %v848_v27 = vpop.eup %847 }
 0x242   : > { %v661_v28 = vmul.f32 %v848_v27, %v659_v26  ;;  %vm666_vm12 = vweird.f32 %v848_v27 }
 0x243   : > { %vm667_vm13 = vmor %vm665_vm5, %vm666_vm12 }
 0x244   : > { %v662_v29 = vsub.f32 1.0, %v661_v28 }
 0x246   : > { %v663_v31 = vmul.f32 %v848_v27, %v662_v29 }
 0x248   : > { %v664_v33 = vadd.f32 %v848_v27, %v663_v31 }
 0x24a   : > { %v668_v39 = vsel %vm667_vm13, %v848_v27, %v664_v33 }
 0x24b   : > { %v673_v40 = vsel %vm670_vm14, %v672_v34, %v668_v39 }
 0x24c   : > { %677 = vperm.xlu2 %841, %v673_v40  }
 0x254   : > { %842 = vset.pattern.permute.xlu2 %v861_v6 }
 0x255   : > { %715 = vperm.xlu2 %842, %v984_v36  }
 0x25d   : > { %843 = vset.pattern.permute.xlu2 %v859_v3 }
 0x25e   : > { %727 = vperm.xlu2 %843, %v724_v0  }
 0x2a6   : > { %v678_v43 = vpop.permute.xlu2 %677 }
 0x2a7   : > { %v680_v44 = vmul.f32 %v678_v43, %v626_v60  ;;  %v681_v24 = vmul.f32 %v678_v43, %v627_v61 }
 0x2a9   : > { %v688_v45 = vperm.slane %v680_v44, 0  ;;  %v689_v25 = vperm.slane %v681_v24, 0  ;;  %v698_v46 = vperm.slane %v680_v44, 1  ;;  %v699_v35 = vperm.slane %v681_v24, 1 }
 0x2aa   : > { %v708_v48 = vperm.slane %v680_v44, 2  ;;  %v709_v49 = vperm.slane %v681_v24, 2  ;;  %v718_v50 = vperm.slane %v680_v44, 3  ;;  %v719_v56 = vperm.slane %v681_v24, 3 }
 0x2ab   : > { %v690_v6 = vmul.f32 %v688_v45, %v686_v38  ;;  %v691_v55 = vmul.f32 %v689_v25, %v686_v38  ;;  %v700_v36 = vmul.f32 %v698_v46, %v696_v41  ;;  %v701_v47 = vmul.f32 %v699_v35, %v696_v41 }
 0x2ac   : > { %v710_v58 = vmul.f32 %v708_v48, %v706_v42  ;;  %v711_v59 = vmul.f32 %v709_v49, %v706_v42 }
 0x2ad   : > { %v702_v3 = vadd.f32 %v700_v36, %v690_v6  ;;  %v703_v54 = vadd.f32 %v701_v47, %v691_v55 }
 0x2af   : > { %v716_v51 = vpop.permute.xlu2 %715  ;;  %v712_v61 = vadd.f32 %v710_v58, %v702_v3  ;;  %v713_v62 = vadd.f32 %v711_v59, %v703_v54 }
 0x2b0   : > { %v720_v37 = vmul.f32 %v718_v50, %v716_v51  ;;  %v721_v60 = vmul.f32 %v719_v56, %v716_v51 }
 0x2b2   : > { %v722_v63 = vadd.f32 %v720_v37, %v712_v61  ;;  %v723_v1 = vadd.f32 %v721_v60, %v713_v62 }
 0x2b8   : > { %v728_v2 = vpop.permute.xlu2 %727 }
 0x2b9   : > { %v730_v4 = vadd.f32 %v728_v2, %v722_v63  ;;  %v731_v5 = vadd.f32 %v728_v2, %v723_v1 }
 0x2bb   : > { %732 = vst [vmem:[%s359_s12] sm:$0xff] %v730_v4 }
 0x2bc   : > { %733 = vst [vmem:[%s359_s12 + $0x8] sm:$0xff] %v731_v5 }
 0x2bd PF: > { %s20_s13 = sadd.s32 1, %s855_s13  }
 0x2be   : > { %p17_p4 = scmp.ge.s32.totalorder %s20_s13, 4  }
 0x2c0   :  { %19 = sbr.rel (!%p17_p4) target bundleno = 1 (0x1), region = 91 }

</bundles_post_ra>
